<compile_context>
chip_gen: v7x
topology: tpu7x:2x2x1
jax: 0.10.0
libtpu: 0.0.40
codegen_flags: <defaults>
</compile_context>

<pallas_src>
import jax
import jax.numpy as jnp
from jax.experimental import pallas as pl
from jax.experimental.pallas import tpu as pltpu


_LANE = 128
_SUBLANE = 8
_BUF_BUDGET_BYTES = 8 * 1024 * 1024      # per pipeline buffer (double-buffered by Pallas)
_VMEM_LIMIT_BYTES = 32 * 1024 * 1024     # safe on v5e/v6e/v7x; >= 2x budget + slack


# ----------------------------- kernels ------------------------------------


def _rotary_kernel(t_ref, inv_ref, out_ref):
    # t_ref: (TILE, 1) f32, inv_ref: (1, hidden) f32 (inv_freq already duplicated),
    # out_ref: (TILE, hidden) f32.  Single broadcasted multiply -> one dense store.
    out_ref[...] = t_ref[...] * inv_ref[...]


def _rotary_int_kernel(inv_ref, out_ref):
    # Int path (t = python int -> arange): positions generated in-kernel with a
    # broadcasted iota, so there is no position input DMA at all.
    # inv_ref: (1, hidden) f32 (duplicated), out_ref: (TILE, hidden) f32.
    tile = out_ref.shape[0]
    base = pl.program_id(0) * tile
    pos = base + jax.lax.broadcasted_iota(jnp.int32, out_ref.shape, 0)
    out_ref[...] = pos.astype(jnp.float32) * inv_ref[...]


# ----------------------------- wrappers ------------------------------------


def make_inv_freq(hidden_size: int, theta: float = 10000.0) -> jnp.ndarray:
    # Deterministic "parameter" init, exactly as the module's __init__.
    return (
        1.0
        / theta ** (jnp.arange(0, hidden_size, 2, dtype=jnp.float32) / hidden_size)
    ).astype(jnp.float32)


def _round_up(x: int, m: int) -> int:
    return -(-x // m) * m


def _padded_row_bytes(cols: int) -> int:
    # VMEM / HBM tiled layout pads the lane (last) dim to a multiple of 128 f32 lanes.
    return _round_up(max(cols, 1), _LANE) * 4


def _pick_tile_rows(seq: int, vmem_row_bytes: int,
                    buf_budget_bytes: int = _BUF_BUDGET_BYTES) -> int:
    """Byte-derived sequence tile.

    - max_rows keeps one pipeline buffer (output block + any per-row input blocks)
      under `buf_budget_bytes`; Pallas double-buffers, so total ~= 2x budget.
    - The block count is forced to an even value >= 2 so the "parallel" grid axis
      can be sharded across both TensorCores on v7x.
    - Rows are rounded to sublane multiples of 8 (or the full extent when smaller).
    """
    max_rows = max(_SUBLANE, (buf_budget_bytes // vmem_row_bytes) // _SUBLANE * _SUBLANE)
    n_blocks = max(2, pl.cdiv(seq, max_rows))
    n_blocks += n_blocks % 2                      # even -> balanced across 2 TCs
    tile = _round_up(pl.cdiv(seq, n_blocks), _SUBLANE)
    return min(tile, seq)


def rotary_embedding(t, inv_freq: jnp.ndarray, *, xla_fallback_rows: int = 512):
    """Forward pass of RotaryEmbedding.

    t: python int (-> arange(t)) or 1-D array of positions.
    inv_freq: (hidden/2,) float32 buffer.
    Returns (seq, hidden) float32.
    """
    half = int(inv_freq.shape[0])
    hidden = 2 * half
    # Pre-duplicate inv_freq -> (1, hidden): kills the in-kernel lane-axis concat.
    inv_dup = jnp.concatenate([inv_freq, inv_freq]).astype(jnp.float32).reshape(1, hidden)

    # TODO(synk): isinstance(t, int) dispatch is eager-only; under jit use the int path
    # with a static seq argument.
    is_int = isinstance(t, int)
    seq = t if is_int else int(t.shape[0])

    if seq <= xla_fallback_rows:
        # Decode-style tiny tables: kernel launch + pipeline prologue costs more than the
        # store itself, and XLA can fuse this with downstream cos/sin.
        pos = jnp.arange(seq, dtype=jnp.float32) if is_int else t.astype(jnp.float32)
        return pos[:, None] * inv_dup

    params = pltpu.CompilerParams(
        dimension_semantics=("parallel",),
        vmem_limit_bytes=_VMEM_LIMIT_BYTES,
    )
    out_row_bytes = _padded_row_bytes(hidden)

    if is_int:
        # No position input at all: only the tiny (1, hidden) inv row is DMA'd.
        tile = _pick_tile_rows(seq, out_row_bytes)
        return pl.pallas_call(
            _rotary_int_kernel,
            out_shape=jax.ShapeDtypeStruct((seq, hidden), jnp.float32),
            grid=(pl.cdiv(seq, tile),),
            in_specs=[pl.BlockSpec((1, hidden), lambda i: (0, 0))],
            out_specs=pl.BlockSpec((tile, hidden), lambda i: (i, 0)),
            compiler_params=params,
        )(inv_dup)

    # Tensor-of-positions path.  The (rows, 1) position block lane-pads to 128 in VMEM,
    # so it is charged to the byte budget alongside the output block.
    t2 = t.astype(jnp.float32).reshape(seq, 1)
    tile = _pick_tile_rows(seq, out_row_bytes + _padded_row_bytes(1))
    return pl.pallas_call(
        _rotary_kernel,
        out_shape=jax.ShapeDtypeStruct((seq, hidden), jnp.float32),
        grid=(pl.cdiv(seq, tile),),
        in_specs=[
            pl.BlockSpec((tile, 1), lambda i: (i, 0)),
            pl.BlockSpec((1, hidden), lambda i: (0, 0)),
        ],
        out_specs=pl.BlockSpec((tile, hidden), lambda i: (i, 0)),
        compiler_params=params,
    )(t2, inv_dup)


# ----------------------------- reference / test -----------------------------


def _reference(t, inv_freq):
    if isinstance(t, int):
        t = jnp.arange(t, dtype=jnp.float32)
    t = t.astype(jnp.float32)
    freqs = jnp.einsum("i,j->ij", t, inv_freq)
    return jnp.concatenate((freqs, freqs), axis=-1)


if __name__ == "__main__":
    hidden_size = 32
    seq = 8
    key = jax.random.PRNGKey(0)

    inv_freq = make_inv_freq(hidden_size)

    # --- small, module-sized shapes: force the Pallas path so the kernel itself runs ---
    t_tensor = jax.random.randint(key, (seq,), 0, 100).astype(jnp.int32)
    out_tensor = jax.block_until_ready(
        rotary_embedding(t_tensor, inv_freq, xla_fallback_rows=0))
    ref_tensor = _reference(t_tensor, inv_freq)
    assert out_tensor.shape == (seq, hidden_size)
    assert out_tensor.dtype == jnp.float32
    assert jnp.allclose(out_tensor, ref_tensor, atol=1e-6, rtol=1e-6)

    out_int = jax.block_until_ready(
        rotary_embedding(seq, inv_freq, xla_fallback_rows=0))
    assert out_int.shape == (seq, hidden_size)
    assert out_int.dtype == jnp.float32
    assert jnp.allclose(out_int, _reference(seq, inv_freq), atol=1e-6, rtol=1e-6)

    # Default dispatch at this size takes the XLA fast path; must match too.
    out_small_xla = jax.block_until_ready(rotary_embedding(t_tensor, inv_freq))
    assert jnp.allclose(out_small_xla, ref_tensor, atol=1e-6, rtol=1e-6)

    # --- larger shapes: >=2-block parallel grid (megacore) on both paths ---
    seq_big = 4096
    t_big = jnp.arange(seq_big, dtype=jnp.int32)
    out_big = jax.block_until_ready(rotary_embedding(t_big, inv_freq))
    assert jnp.allclose(out_big, _reference(t_big, inv_freq), atol=1e-6, rtol=1e-6)

    out_big_int = jax.block_until_ready(rotary_embedding(seq_big, inv_freq))
    assert jnp.allclose(out_big_int, _reference(seq_big, inv_freq), atol=1e-6, rtol=1e-6)

    # Non-dividing seq: exercises the masked partial last block + in-kernel iota offsets.
    seq_ragged = 1000
    out_ragged = jax.block_until_ready(rotary_embedding(seq_ragged, inv_freq))
    assert jnp.allclose(out_ragged, _reference(seq_ragged, inv_freq), atol=1e-6, rtol=1e-6)

    print("KERNEL_OK")
</pallas_src>

<mosaic_0001>
module attributes {stable_mosaic.version = 11 : i64} {
  func.func @_rotary_kernel(%arg0: i32, %arg1: memref<8x1xf32, #tpu.memory_space<vmem>>, %arg2: memref<1x32xf32, #tpu.memory_space<vmem>>, %arg3: memref<8x32xf32, #tpu.memory_space<vmem>>) attributes {dimension_semantics = [#tpu.dimension_semantics<parallel>], iteration_bounds = array<i64: 1>, scalar_prefetch = 0 : i64, scratch_operands = 0 : i64, tpu.core_type = #tpu.core_type<tc>, window_params = [{transform_indices = @transform_0, window_bounds = array<i64: 8, 1>}, {pipeline_mode = #tpu.pipeline_mode<synchronous>, transform_indices = @transform_1, window_bounds = array<i64: 1, 32>}, {transform_indices = @transform_2, window_bounds = array<i64: 8, 32>}]} {
    %c0 = arith.constant 0 : index
    %c0_0 = arith.constant 0 : index
    %0 = vector.load %arg1[%c0, %c0_0] : memref<8x1xf32, #tpu.memory_space<vmem>>, vector<8x1xf32>
    %c0_1 = arith.constant 0 : index
    %c0_2 = arith.constant 0 : index
    %1 = vector.load %arg2[%c0_1, %c0_2] : memref<1x32xf32, #tpu.memory_space<vmem>>, vector<1x32xf32>
    %2 = vector.broadcast %0 : vector<8x1xf32> to vector<8x32xf32>
    %3 = vector.broadcast %1 : vector<1x32xf32> to vector<8x32xf32>
    %4 = arith.mulf %2, %3 : vector<8x32xf32>
    %c0_3 = arith.constant 0 : index
    %c0_4 = arith.constant 0 : index
    %5 = vector.load %arg3[%c0_3, %c0_4] : memref<8x32xf32, #tpu.memory_space<vmem>>, vector<8x32xf32>
    tpu.vector_store %arg3[%c0_3, %c0_4], %4 {strides = array<i32>} : memref<8x32xf32, #tpu.memory_space<vmem>>, vector<8x32xf32>,
    return
  }
  func.func @transform_0(%arg0: i32) -> (i32, i32) {
    %c0_i32 = arith.constant 0 : i32
    %c0_i32_0 = arith.constant 0 : i32
    return %arg0, %c0_i32 : i32, i32
  }
  func.func @transform_1(%arg0: i32) -> (i32, i32) {
    %c0_i32 = arith.constant 0 : i32
    %c0_i32_0 = arith.constant 0 : i32
    %c0_i32_1 = arith.constant 0 : i32
    return %c0_i32, %c0_i32_0 : i32, i32
  }
  func.func @transform_2(%arg0: i32) -> (i32, i32) {
    %c0_i32 = arith.constant 0 : i32
    %c0_i32_0 = arith.constant 0 : i32
    return %arg0, %c0_i32 : i32, i32
  }
}

</mosaic_0001>

<bundles_post_ra>
// kernel: tpu_custom_call.1
= control target key start
LH: loop header
LB: loop body
LE: loop exit
PB: predicated region body
PF: predicated region fallthrough
CT: control target
= control target key end

     0   :  { %s105_s0 = inlined_call_operand.vmem [shape: f32[8,1], index: 0, kind: input, shape index: {}]   ;;  %s106_s1 = inlined_call_operand.vmem [shape: f32[1,32], index: 1, kind: input, shape index: {}]   ;;  %s107_s2 = inlined_call_operand.hbm [shape: f32[8,32], index: 2, kind: output, shape index: {}]  }
   0x1   :  { %v12_v0 = vld [vmem:[%s105_s0] sm:$0xff] }
   0x2   :  { %7 = vsyncpa [#allocation3], 0  ;;  %v70_v1 = vmov 0   ;;  %v42_v2 = vld [vmem:[%s106_s1] ss:$0 sm:$0xff]  ;;  %s71_s13 = smov [#allocation2]  }
   0x3   :  { %45 = vset.pattern.permute.xlu0 %v70_v1  ;;  %s34_s14 = sshll.u32 %s71_s13, 4  ;;  %vm26_vm0 = vcmask 261120   ;;  %s35_s14 = int_to_ptr.vmem [resolvable:$true] %s34_s14 }
   0x4   :  { %16 = vperm.xlu0 %45, %v12_v0   ;;  %s46_s15 = scalar_lea.vmem %s35_s14, 128  ;;  %p51_p1 = scmp.lt.s32.totalorder %s35_s14, %s35_s14 }
   0x5   :  { %p47_p0 = scmp.ne.s32.totalorder %s35_s14, %s46_s15  ;;  %p52_p2 = scmp.lt.s32.totalorder %s46_s15, %s46_s15 }
   0x7   :  { %p53_p3 = por %p52_p2, %p51_p1 }
   0x9   :  { %p54_p4 = pnand %p53_p3, %p47_p0 }
  0x83   :  { %v17_v3 = vpop.permute.xlu0 %16 }
  0x84   :  { %v25_v4 = vmul.f32 %v42_v2, %v17_v3 }
  0x86   :  { %27 = vst.msk [vmem:[#allocation2] sm:$0xff] %vm26_vm0, %v25_v4 }
  0x87   :  { %57 = shalt.err (!%p54_p4)
}
  0x88   :  { %s58_s17 = scalar_lea.hbm %s107_s2, 128 }
  0x89   :  { %p59_p5 = scmp.ne.s32.totalorder %s107_s2, %s58_s17  ;;  %p62_p6 = scmp.lt.u32.totalorder %s58_s17, %s107_s2 }
  0x8b   :  { %p64_p7 = pnand %p62_p6, %p59_p5 }
  0x8d   :  { %67 = shalt.err (!%p64_p7)
}
  0x8e   :  { %37 = dma.vmem_to_hbm [thread:$0]  %s35_s14, 128, %s107_s2, [#allocation3]  }
  0x8f   :  { %68 = dma.done.wait [#allocation3], 128  }
  0x90   :  { %69 = vsyncadd [#allocation3], 4294967168 }
  0x91   :  { %41 = vsyncpa [#allocation3], 1 }

</bundles_post_ra>
